<compile_context>
chip_gen: v5e
topology: v5e:2x2
jax: 0.10.0
libtpu: 0.0.40
codegen_flags: <defaults>
</compile_context>

<pallas_src>
import functools

import jax
import jax.numpy as jnp
from jax.experimental import pallas as pl
from jax.experimental.pallas import tpu as pltpu


# Geometry this kernel is specialized to (matches the module's usage).
IMG_H, IMG_W, IMG_C = 7, 7, 3
C1, C2, C3 = 16, 32, 64
IMG_FLAT = IMG_H * IMG_W * IMG_C        # 147
C1_FLAT = 6 * 6 * C1                    # 576  (conv1 output, lane = r*96+j*16+co)
POOL_FLAT = 3 * 3 * C1                  # 144  (pooled,      lane = ph*48+pw*16+co)
C2_FLAT = 2 * 2 * C2                    # 128  (conv2 output, lane = r*64+j*32+co)
HEAD_HIDDEN = 128                       # [actor hidden 64 | critic hidden 64]
OUT_PAD = 128                           # lane-dense packed output width


# ------------------------------ fused kernel -------------------------------

def _fused_forward_kernel(img_ref, dat_ref,
                          w1_ref, b1_ref, w2_ref, b2_ref, w3_ref, b3_ref,
                          wh1_ref, bh1_ref, wh2_ref, bh2_ref,
                          out_ref, *, num_actions):
    f32 = jnp.float32
    bf16 = jnp.bfloat16

    # conv1 + ReLU: one banded matmul over the flattened NHWC image rows.
    img = img_ref[...]                                       # (TB, 147) bf16
    c1 = jnp.dot(img, w1_ref[...], preferred_element_type=f32)
    c1 = jnp.maximum(c1 + b1_ref[...], 0.0)                  # (TB, 576)

    # maxpool 2x2 on lanes (lane = r*96 + j*16 + co), all in-register VPU work.
    hp0 = jnp.maximum(c1[:, 0:96],    c1[:, 96:192])         # rows 0,1
    hp1 = jnp.maximum(c1[:, 192:288], c1[:, 288:384])        # rows 2,3
    hp2 = jnp.maximum(c1[:, 384:480], c1[:, 480:576])        # rows 4,5

    def _wpool(hp):                                          # (TB,96) -> (TB,48)
        return jnp.concatenate([
            jnp.maximum(hp[:, 0:16],  hp[:, 16:32]),
            jnp.maximum(hp[:, 32:48], hp[:, 48:64]),
            jnp.maximum(hp[:, 64:80], hp[:, 80:96])], axis=-1)

    pooled = jnp.concatenate([_wpool(hp0), _wpool(hp1), _wpool(hp2)],
                             axis=-1)                        # (TB, 144)

    # conv2 + ReLU, conv3 + ReLU: one banded matmul each.
    c2 = jnp.dot(pooled.astype(bf16), w2_ref[...], preferred_element_type=f32)
    c2 = jnp.maximum(c2 + b2_ref[...], 0.0)                  # (TB, 128)
    c3 = jnp.dot(c2.astype(bf16), w3_ref[...], preferred_element_type=f32)
    c3 = jnp.maximum(c3 + b3_ref[...], 0.0)                  # (TB, 64) == torch flatten

    # merged actor + critic heads.
    feat = jnp.concatenate([c3, dat_ref[...]], axis=-1).astype(bf16)  # (TB, 64+D)
    h = jnp.tanh(jnp.dot(feat, wh1_ref[...], preferred_element_type=f32)
                 + bh1_ref[...])                             # (TB, 128)
    out2 = jnp.dot(h.astype(bf16), wh2_ref[...],
                   preferred_element_type=f32) + bh2_ref[...]  # (TB, 128)

    # masked log-softmax over the first `num_actions` lanes; value at lane A,
    # padded lanes written as 0 -> full-width lane-dense store.
    col = jax.lax.broadcasted_iota(jnp.int32, out2.shape, 1)
    is_logit = col < num_actions
    masked = jnp.where(is_logit, out2, jnp.float32(-1e30))
    m = jnp.max(masked, axis=-1, keepdims=True)
    lse = jnp.log(jnp.sum(jnp.exp(masked - m), axis=-1, keepdims=True))
    logp = (out2 - m) - lse
    out_ref[...] = jnp.where(is_logit, logp,
                             jnp.where(col == num_actions, out2, 0.0))


# ------------------------------ wrapper -------------------------------------

def _full_spec(arr):
    nd = arr.ndim
    return pl.BlockSpec(arr.shape, lambda b: (0,) * nd)


def _round_up(x, m):
    return (x + m - 1) // m * m


def actor_critic_forward(image_nhwc, data, fp, *, num_actions, tile_b=128):
    """image_nhwc: (B,7,7,3) f32; data: (B,D) f32; fp: prepare_params output.
    Returns (log_probs (B,A), value (B,)) — the Categorical log-probs + value."""
    B, H, W, C = image_nhwc.shape
    assert (H, W, C) == (IMG_H, IMG_W, IMG_C), "kernel specialized to 7x7x3 images"
    D = data.shape[1]
    A = int(num_actions)
    assert A + 1 <= OUT_PAD

    # Batch tile: multiple of 8 sublanes; pad batch to a whole number of tiles.
    tb = min(int(tile_b), _round_up(B, 8))
    tb = _round_up(tb, 8)
    B_pad = _round_up(B, tb)

    img = image_nhwc.reshape(B, IMG_FLAT).astype(jnp.bfloat16)  # free collapse + cheap DMA
    dat = data.astype(jnp.float32)
    if B_pad != B:
        img = jnp.pad(img, ((0, B_pad - B), (0, 0)))
        dat = jnp.pad(dat, ((0, B_pad - B), (0, 0)))

    weights = (fp["w1"], fp["b1"], fp["w2"], fp["b2"], fp["w3"], fp["b3"],
               fp["wh1"], fp["bh1"], fp["wh2"], fp["bh2"])

    grid = (B_pad // tb,)
    in_specs = [pl.BlockSpec((tb, IMG_FLAT), lambda b: (b, 0)),
                pl.BlockSpec((tb, D), lambda b: (b, 0))]
    # Weights: grid-invariant full blocks -> DMA'd once, VMEM resident (~0.3 MB).
    in_specs += [_full_spec(w) for w in weights]

    flops = 2 * B_pad * (IMG_FLAT * C1_FLAT + POOL_FLAT * C2_FLAT
                         + C2_FLAT * C3 + (C3 + D) * HEAD_HIDDEN
                         + HEAD_HIDDEN * OUT_PAD)
    transcendentals = B_pad * (HEAD_HIDDEN + OUT_PAD + 1)   # tanh + exp + log
    weight_bytes = sum(int(w.size) * w.dtype.itemsize for w in weights)
    bytes_accessed = (B_pad * IMG_FLAT * 2 + B_pad * D * 4
                      + B_pad * OUT_PAD * 4 + weight_bytes)

    out = pl.pallas_call(
        functools.partial(_fused_forward_kernel, num_actions=A),
        out_shape=jax.ShapeDtypeStruct((B_pad, OUT_PAD), jnp.float32),
        grid=grid,
        in_specs=in_specs,
        out_specs=pl.BlockSpec((tb, OUT_PAD), lambda b: (b, 0)),
        compiler_params=pltpu.CompilerParams(
            dimension_semantics=("parallel",)),
        cost_estimate=pl.CostEstimate(
            flops=flops, transcendentals=transcendentals,
            bytes_accessed=bytes_accessed),
    )(img, dat, *weights)

    return out[:B, :A], out[:B, A]


# ----------------------- parameter preparation ------------------------------

def _conv_as_matrix(w, in_h, in_w):
    """w: (kh,kw,cin,cout) conv taps -> dense banded matrix mapping the
    row-major flattened (in_h,in_w,cin) input to the flattened
    (in_h-kh+1, in_w-kw+1, cout) valid-conv output."""
    kh, kw, cin, cout = w.shape
    oh, ow = in_h - kh + 1, in_w - kw + 1
    M = jnp.zeros((in_h, in_w, cin, oh, ow, cout), jnp.float32)
    for r in range(oh):
        for j in range(ow):
            for dy in range(kh):
                for dx in range(kw):
                    M = M.at[r + dy, j + dx, :, r, j, :].set(w[dy, dx])
    return M.reshape(in_h * in_w * cin, oh * ow * cout)


def prepare_params(p, data_dim, num_outputs):
    """Convert natural (kh,kw,cin,cout) conv weights + (in,out) linear weights
    into the fused-kernel layout (full banded conv matrices in bf16, merged
    actor/critic head matrices, f32 biases)."""
    assert p["a1_w"].shape[0] == C3 + data_dim
    assert num_outputs + 1 <= OUT_PAD
    f32, bf16 = jnp.float32, jnp.bfloat16
    fp = {}
    fp["w1"] = _conv_as_matrix(p["conv1_w"], IMG_H, IMG_W).astype(bf16)  # (147, 576)
    fp["b1"] = jnp.tile(p["conv1_b"].astype(f32), (1, 36))               # (1, 576)
    fp["w2"] = _conv_as_matrix(p["conv2_w"], 3, 3).astype(bf16)          # (144, 128)
    fp["b2"] = jnp.tile(p["conv2_b"].astype(f32), (1, 4))                # (1, 128)
    fp["w3"] = _conv_as_matrix(p["conv3_w"], 2, 2).astype(bf16)          # (128, 64)
    fp["b3"] = p["conv3_b"].astype(f32)                                  # (1, 64)
    # merged actor/critic first layer: feat = [conv_features | data]
    fp["wh1"] = jnp.concatenate([p["a1_w"], p["c1_w"]], axis=1).astype(bf16)  # (64+D, 128)
    fp["bh1"] = jnp.concatenate([p["a1_b"], p["c1_b"]], axis=1).astype(f32)   # (1, 128)
    # merged, lane-padded second layer: block structure keeps heads independent
    wh2 = jnp.zeros((HEAD_HIDDEN, OUT_PAD), f32)
    wh2 = wh2.at[:64, :num_outputs].set(p["a2_w"])
    wh2 = wh2.at[64:, num_outputs:num_outputs + 1].set(p["c2_w"])
    fp["wh2"] = wh2.astype(bf16)                                         # (128, 128)
    bh2 = jnp.zeros((1, OUT_PAD), f32)
    bh2 = bh2.at[:, :num_outputs].set(p["a2_b"])
    bh2 = bh2.at[:, num_outputs:num_outputs + 1].set(p["c2_b"])
    fp["bh2"] = bh2                                                      # (1, 128)
    return fp


# --------------------------- deterministic params ---------------------------

def init_linear(key, fan_in, fan_out):
    # replicates init_params: weight ~ N(0,1), each output unit's weight vector
    # normalized to unit L2 norm over the input dim; bias = 0.
    w = jax.random.normal(key, (fan_in, fan_out), jnp.float32)
    w = w / jnp.sqrt(jnp.sum(w * w, axis=0, keepdims=True))
    return w, jnp.zeros((1, fan_out), jnp.float32)


def init_conv(key, cin, cout):
    # torch default conv init is Kaiming-uniform; deterministic scaled normal here.
    # TODO(synk): to load real torch Conv2d weights, permute (cout,cin,kh,kw)->(kh,kw,cin,cout).
    w = jax.random.normal(key, (2, 2, cin, cout), jnp.float32) / jnp.sqrt(4.0 * cin)
    return w, jnp.zeros((1, cout), jnp.float32)


# --------------------------- plain-JAX reference ----------------------------

def reference_forward(image_nhwc, data, p):
    def conv2x2_relu(x, w, b):
        o = (x[:, :-1, :-1, :] @ w[0, 0] + x[:, :-1, 1:, :] @ w[0, 1]
             + x[:, 1:, :-1, :] @ w[1, 0] + x[:, 1:, 1:, :] @ w[1, 1]) + b
        return jnp.maximum(o, 0.0)

    x = conv2x2_relu(image_nhwc, p["conv1_w"], p["conv1_b"])
    B, H, W, C = x.shape
    x = x.reshape(B, H // 2, 2, W // 2, 2, C).max(axis=(2, 4))   # maxpool 2x2
    x = conv2x2_relu(x, p["conv2_w"], p["conv2_b"])
    x = conv2x2_relu(x, p["conv3_w"], p["conv3_b"])
    x1 = x.reshape(B, -1)
    feat = jnp.concatenate([x1, data], axis=1)
    ha = jnp.tanh(feat @ p["a1_w"] + p["a1_b"])
    logits = ha @ p["a2_w"] + p["a2_b"]
    logp = jax.nn.log_softmax(logits, axis=1)
    hv = jnp.tanh(feat @ p["c1_w"] + p["c1_b"])
    value = (hv @ p["c2_w"] + p["c2_b"])[:, 0]
    return logp, value


if __name__ == "__main__":
    key = jax.random.PRNGKey(0)
    ks = jax.random.split(key, 9)

    B = 2
    data_dim = 4
    num_outputs = 5
    num_inputs = C3 + data_dim   # 68 = flattened conv features + data

    raw = {}
    raw["conv1_w"], raw["conv1_b"] = init_conv(ks[0], IMG_C, C1)
    raw["conv2_w"], raw["conv2_b"] = init_conv(ks[1], C1, C2)
    raw["conv3_w"], raw["conv3_b"] = init_conv(ks[2], C2, C3)
    raw["a1_w"], raw["a1_b"] = init_linear(ks[3], num_inputs, 64)
    raw["a2_w"], raw["a2_b"] = init_linear(ks[4], 64, num_outputs)
    raw["c1_w"], raw["c1_b"] = init_linear(ks[5], num_inputs, 64)
    raw["c2_w"], raw["c2_b"] = init_linear(ks[6], 64, 1)

    fp = prepare_params(raw, data_dim, num_outputs)

    image = jax.random.uniform(ks[7], (B, IMG_H, IMG_W, IMG_C), jnp.float32)
    data = jax.random.normal(ks[8], (B, data_dim), jnp.float32)

    fwd = jax.jit(actor_critic_forward,
                  static_argnames=("num_actions", "tile_b"))
    logp, value = fwd(image, data, fp, num_actions=num_outputs)
    jax.block_until_ready((logp, value))

    assert logp.shape == (B, num_outputs)
    assert value.shape == (B,)
    # log_softmax rows must sum to ~1 in prob space
    assert bool(jnp.all(jnp.abs(jnp.sum(jnp.exp(logp), axis=1) - 1.0) < 1e-3))

    # cross-check the fused kernel against a plain-JAX reference of the forward
    ref_logp, ref_value = reference_forward(image, data, raw)
    assert bool(jnp.allclose(logp, ref_logp, atol=5e-2, rtol=5e-2))
    assert bool(jnp.allclose(value, ref_value, atol=5e-2, rtol=5e-2))

    print("KERNEL_OK")
</pallas_src>

<mosaic_0001>
module attributes {stable_mosaic.version = 11 : i64} {
  func.func @_fused_forward_kernel(%arg0: i32, %arg1: memref<8x147xbf16, #tpu.memory_space<vmem>>, %arg2: memref<8x4xf32, #tpu.memory_space<vmem>>, %arg3: memref<147x576xbf16, #tpu.memory_space<vmem>>, %arg4: memref<1x576xf32, #tpu.memory_space<vmem>>, %arg5: memref<144x128xbf16, #tpu.memory_space<vmem>>, %arg6: memref<1x128xf32, #tpu.memory_space<vmem>>, %arg7: memref<128x64xbf16, #tpu.memory_space<vmem>>, %arg8: memref<1x64xf32, #tpu.memory_space<vmem>>, %arg9: memref<68x128xbf16, #tpu.memory_space<vmem>>, %arg10: memref<1x128xf32, #tpu.memory_space<vmem>>, %arg11: memref<128x128xbf16, #tpu.memory_space<vmem>>, %arg12: memref<1x128xf32, #tpu.memory_space<vmem>>, %arg13: memref<8x128xf32, #tpu.memory_space<vmem>>) attributes {dimension_semantics = [#tpu.dimension_semantics<parallel>], iteration_bounds = array<i64: 1>, scalar_prefetch = 0 : i64, scratch_operands = 0 : i64, tpu.core_type = #tpu.core_type<tc>, window_params = [{transform_indices = @transform_0, window_bounds = array<i64: 8, 147>}, {transform_indices = @transform_1, window_bounds = array<i64: 8, 4>}, {pipeline_mode = #tpu.pipeline_mode<synchronous>, transform_indices = @transform_2, window_bounds = array<i64: 147, 576>}, {pipeline_mode = #tpu.pipeline_mode<synchronous>, transform_indices = @transform_3, window_bounds = array<i64: 1, 576>}, {pipeline_mode = #tpu.pipeline_mode<synchronous>, transform_indices = @transform_4, window_bounds = array<i64: 144, 128>}, {pipeline_mode = #tpu.pipeline_mode<synchronous>, transform_indices = @transform_5, window_bounds = array<i64: 1, 128>}, {pipeline_mode = #tpu.pipeline_mode<synchronous>, transform_indices = @transform_6, window_bounds = array<i64: 128, 64>}, {pipeline_mode = #tpu.pipeline_mode<synchronous>, transform_indices = @transform_7, window_bounds = array<i64: 1, 64>}, {pipeline_mode = #tpu.pipeline_mode<synchronous>, transform_indices = @transform_8, window_bounds = array<i64: 68, 128>}, {pipeline_mode = #tpu.pipeline_mode<synchronous>, transform_indices = @transform_9, window_bounds = array<i64: 1, 128>}, {pipeline_mode = #tpu.pipeline_mode<synchronous>, transform_indices = @transform_10, window_bounds = array<i64: 128, 128>}, {pipeline_mode = #tpu.pipeline_mode<synchronous>, transform_indices = @transform_11, window_bounds = array<i64: 1, 128>}, {transform_indices = @transform_12, window_bounds = array<i64: 8, 128>}]} {
    %c0 = arith.constant 0 : index
    %c0_0 = arith.constant 0 : index
    %0 = vector.load %arg1[%c0, %c0_0] : memref<8x147xbf16, #tpu.memory_space<vmem>>, vector<8x147xbf16>
    %c0_1 = arith.constant 0 : index
    %c0_2 = arith.constant 0 : index
    %1 = vector.load %arg3[%c0_1, %c0_2] : memref<147x576xbf16, #tpu.memory_space<vmem>>, vector<147x576xbf16>
    %cst = arith.constant dense<0.000000e+00> : vector<8x576xf32>
    %2 = tpu.matmul %0, %1, %cst {dimension_numbers = #tpu.dot_dimension_numbers<[1], [0], [0], [1], [0, 0, 1, 1], [], []>} : vector<8x147xbf16>, vector<147x576xbf16>, vector<8x576xf32> -> vector<8x576xf32>
    %c0_3 = arith.constant 0 : index
    %c0_4 = arith.constant 0 : index
    %3 = vector.load %arg4[%c0_3, %c0_4] : memref<1x576xf32, #tpu.memory_space<vmem>>, vector<1x576xf32>
    %4 = vector.broadcast %3 : vector<1x576xf32> to vector<8x576xf32>
    %5 = arith.addf %2, %4 : vector<8x576xf32>
    %cst_5 = arith.constant 0.000000e+00 : f32
    %6 = vector.broadcast %cst_5 : f32 to vector<8x576xf32>
    %7 = arith.maximumf %5, %6 : vector<8x576xf32>
    %8 = vector.extract_strided_slice %7 {offsets = [0, 0], sizes = [8, 96], strides = [1, 1]} : vector<8x576xf32> to vector<8x96xf32>
    %9 = vector.extract_strided_slice %7 {offsets = [0, 96], sizes = [8, 96], strides = [1, 1]} : vector<8x576xf32> to vector<8x96xf32>
    %10 = arith.maximumf %8, %9 : vector<8x96xf32>
    %11 = vector.extract_strided_slice %7 {offsets = [0, 192], sizes = [8, 96], strides = [1, 1]} : vector<8x576xf32> to vector<8x96xf32>
    %12 = vector.extract_strided_slice %7 {offsets = [0, 288], sizes = [8, 96], strides = [1, 1]} : vector<8x576xf32> to vector<8x96xf32>
    %13 = arith.maximumf %11, %12 : vector<8x96xf32>
    %14 = vector.extract_strided_slice %7 {offsets = [0, 384], sizes = [8, 96], strides = [1, 1]} : vector<8x576xf32> to vector<8x96xf32>
    %15 = vector.extract_strided_slice %7 {offsets = [0, 480], sizes = [8, 96], strides = [1, 1]} : vector<8x576xf32> to vector<8x96xf32>
    %16 = arith.maximumf %14, %15 : vector<8x96xf32>
    %17 = vector.extract_strided_slice %10 {offsets = [0, 0], sizes = [8, 16], strides = [1, 1]} : vector<8x96xf32> to vector<8x16xf32>
    %18 = vector.extract_strided_slice %10 {offsets = [0, 16], sizes = [8, 16], strides = [1, 1]} : vector<8x96xf32> to vector<8x16xf32>
    %19 = arith.maximumf %17, %18 : vector<8x16xf32>
    %20 = vector.extract_strided_slice %10 {offsets = [0, 32], sizes = [8, 16], strides = [1, 1]} : vector<8x96xf32> to vector<8x16xf32>
    %21 = vector.extract_strided_slice %10 {offsets = [0, 48], sizes = [8, 16], strides = [1, 1]} : vector<8x96xf32> to vector<8x16xf32>
    %22 = arith.maximumf %20, %21 : vector<8x16xf32>
    %23 = vector.extract_strided_slice %10 {offsets = [0, 64], sizes = [8, 16], strides = [1, 1]} : vector<8x96xf32> to vector<8x16xf32>
    %24 = vector.extract_strided_slice %10 {offsets = [0, 80], sizes = [8, 16], strides = [1, 1]} : vector<8x96xf32> to vector<8x16xf32>
    %25 = arith.maximumf %23, %24 : vector<8x16xf32>
    %26 = tpu.concatenate %19, %22, %25 in 1 : vector<8x16xf32>, vector<8x16xf32>, vector<8x16xf32> -> vector<8x48xf32>
    %27 = vector.extract_strided_slice %13 {offsets = [0, 0], sizes = [8, 16], strides = [1, 1]} : vector<8x96xf32> to vector<8x16xf32>
    %28 = vector.extract_strided_slice %13 {offsets = [0, 16], sizes = [8, 16], strides = [1, 1]} : vector<8x96xf32> to vector<8x16xf32>
    %29 = arith.maximumf %27, %28 : vector<8x16xf32>
    %30 = vector.extract_strided_slice %13 {offsets = [0, 32], sizes = [8, 16], strides = [1, 1]} : vector<8x96xf32> to vector<8x16xf32>
    %31 = vector.extract_strided_slice %13 {offsets = [0, 48], sizes = [8, 16], strides = [1, 1]} : vector<8x96xf32> to vector<8x16xf32>
    %32 = arith.maximumf %30, %31 : vector<8x16xf32>
    %33 = vector.extract_strided_slice %13 {offsets = [0, 64], sizes = [8, 16], strides = [1, 1]} : vector<8x96xf32> to vector<8x16xf32>
    %34 = vector.extract_strided_slice %13 {offsets = [0, 80], sizes = [8, 16], strides = [1, 1]} : vector<8x96xf32> to vector<8x16xf32>
    %35 = arith.maximumf %33, %34 : vector<8x16xf32>
    %36 = tpu.concatenate %29, %32, %35 in 1 : vector<8x16xf32>, vector<8x16xf32>, vector<8x16xf32> -> vector<8x48xf32>
    %37 = vector.extract_strided_slice %16 {offsets = [0, 0], sizes = [8, 16], strides = [1, 1]} : vector<8x96xf32> to vector<8x16xf32>
    %38 = vector.extract_strided_slice %16 {offsets = [0, 16], sizes = [8, 16], strides = [1, 1]} : vector<8x96xf32> to vector<8x16xf32>
    %39 = arith.maximumf %37, %38 : vector<8x16xf32>
    %40 = vector.extract_strided_slice %16 {offsets = [0, 32], sizes = [8, 16], strides = [1, 1]} : vector<8x96xf32> to vector<8x16xf32>
    %41 = vector.extract_strided_slice %16 {offsets = [0, 48], sizes = [8, 16], strides = [1, 1]} : vector<8x96xf32> to vector<8x16xf32>
    %42 = arith.maximumf %40, %41 : vector<8x16xf32>
    %43 = vector.extract_strided_slice %16 {offsets = [0, 64], sizes = [8, 16], strides = [1, 1]} : vector<8x96xf32> to vector<8x16xf32>
    %44 = vector.extract_strided_slice %16 {offsets = [0, 80], sizes = [8, 16], strides = [1, 1]} : vector<8x96xf32> to vector<8x16xf32>
    %45 = arith.maximumf %43, %44 : vector<8x16xf32>
    %46 = tpu.concatenate %39, %42, %45 in 1 : vector<8x16xf32>, vector<8x16xf32>, vector<8x16xf32> -> vector<8x48xf32>
    %47 = tpu.concatenate %26, %36, %46 in 1 : vector<8x48xf32>, vector<8x48xf32>, vector<8x48xf32> -> vector<8x144xf32>
    %48 = arith.truncf %47 : vector<8x144xf32> to vector<8x144xbf16>
    %c0_6 = arith.constant 0 : index
    %c0_7 = arith.constant 0 : index
    %49 = vector.load %arg5[%c0_6, %c0_7] : memref<144x128xbf16, #tpu.memory_space<vmem>>, vector<144x128xbf16>
    %cst_8 = arith.constant dense<0.000000e+00> : vector<8x128xf32>
    %50 = tpu.matmul %48, %49, %cst_8 {dimension_numbers = #tpu.dot_dimension_numbers<[1], [0], [0], [1], [0, 0, 1, 1], [], []>} : vector<8x144xbf16>, vector<144x128xbf16>, vector<8x128xf32> -> vector<8x128xf32>
    %c0_9 = arith.constant 0 : index
    %c0_10 = arith.constant 0 : index
    %51 = vector.load %arg6[%c0_9, %c0_10] : memref<1x128xf32, #tpu.memory_space<vmem>>, vector<1x128xf32>
    %52 = vector.broadcast %51 : vector<1x128xf32> to vector<8x128xf32>
    %53 = arith.addf %50, %52 : vector<8x128xf32>
    %cst_11 = arith.constant 0.000000e+00 : f32
    %54 = vector.broadcast %cst_11 : f32 to vector<8x128xf32>
    %55 = arith.maximumf %53, %54 : vector<8x128xf32>
    %56 = arith.truncf %55 : vector<8x128xf32> to vector<8x128xbf16>
    %c0_12 = arith.constant 0 : index
    %c0_13 = arith.constant 0 : index
    %57 = vector.load %arg7[%c0_12, %c0_13] : memref<128x64xbf16, #tpu.memory_space<vmem>>, vector<128x64xbf16>
    %cst_14 = arith.constant dense<0.000000e+00> : vector<8x64xf32>
    %58 = tpu.matmul %56, %57, %cst_14 {dimension_numbers = #tpu.dot_dimension_numbers<[1], [0], [0], [1], [0, 0, 1, 1], [], []>} : vector<8x128xbf16>, vector<128x64xbf16>, vector<8x64xf32> -> vector<8x64xf32>
    %c0_15 = arith.constant 0 : index
    %c0_16 = arith.constant 0 : index
    %59 = vector.load %arg8[%c0_15, %c0_16] : memref<1x64xf32, #tpu.memory_space<vmem>>, vector<1x64xf32>
    %60 = vector.broadcast %59 : vector<1x64xf32> to vector<8x64xf32>
    %61 = arith.addf %58, %60 : vector<8x64xf32>
    %cst_17 = arith.constant 0.000000e+00 : f32
    %62 = vector.broadcast %cst_17 : f32 to vector<8x64xf32>
    %63 = arith.maximumf %61, %62 : vector<8x64xf32>
    %c0_18 = arith.constant 0 : index
    %c0_19 = arith.constant 0 : index
    %64 = vector.load %arg2[%c0_18, %c0_19] : memref<8x4xf32, #tpu.memory_space<vmem>>, vector<8x4xf32>
    %65 = tpu.concatenate %63, %64 in 1 : vector<8x64xf32>, vector<8x4xf32> -> vector<8x68xf32>
    %66 = arith.truncf %65 : vector<8x68xf32> to vector<8x68xbf16>
    %c0_20 = arith.constant 0 : index
    %c0_21 = arith.constant 0 : index
    %67 = vector.load %arg9[%c0_20, %c0_21] : memref<68x128xbf16, #tpu.memory_space<vmem>>, vector<68x128xbf16>
    %cst_22 = arith.constant dense<0.000000e+00> : vector<8x128xf32>
    %68 = tpu.matmul %66, %67, %cst_22 {dimension_numbers = #tpu.dot_dimension_numbers<[1], [0], [0], [1], [0, 0, 1, 1], [], []>} : vector<8x68xbf16>, vector<68x128xbf16>, vector<8x128xf32> -> vector<8x128xf32>
    %c0_23 = arith.constant 0 : index
    %c0_24 = arith.constant 0 : index
    %69 = vector.load %arg10[%c0_23, %c0_24] : memref<1x128xf32, #tpu.memory_space<vmem>>, vector<1x128xf32>
    %70 = vector.broadcast %69 : vector<1x128xf32> to vector<8x128xf32>
    %71 = arith.addf %68, %70 : vector<8x128xf32>
    %72 = math.tanh %71 : vector<8x128xf32>
    %73 = arith.truncf %72 : vector<8x128xf32> to vector<8x128xbf16>
    %c0_25 = arith.constant 0 : index
    %c0_26 = arith.constant 0 : index
    %74 = vector.load %arg11[%c0_25, %c0_26] : memref<128x128xbf16, #tpu.memory_space<vmem>>, vector<128x128xbf16>
    %cst_27 = arith.constant dense<0.000000e+00> : vector<8x128xf32>
    %75 = tpu.matmul %73, %74, %cst_27 {dimension_numbers = #tpu.dot_dimension_numbers<[1], [0], [0], [1], [0, 0, 1, 1], [], []>} : vector<8x128xbf16>, vector<128x128xbf16>, vector<8x128xf32> -> vector<8x128xf32>
    %c0_28 = arith.constant 0 : index
    %c0_29 = arith.constant 0 : index
    %76 = vector.load %arg12[%c0_28, %c0_29] : memref<1x128xf32, #tpu.memory_space<vmem>>, vector<1x128xf32>
    %77 = vector.broadcast %76 : vector<1x128xf32> to vector<8x128xf32>
    %78 = arith.addf %75, %77 : vector<8x128xf32>
    %79 = tpu.iota {dimensions = array<i32: 1>} : vector<8x128xi32>
    %c5_i32 = arith.constant 5 : i32
    %80 = vector.broadcast %c5_i32 : i32 to vector<8x128xi32>
    %81 = arith.cmpi slt, %79, %80 : vector<8x128xi32>
    %cst_30 = arith.constant -1.000000e+30 : f32
    %82 = vector.broadcast %cst_30 : f32 to vector<8x128xf32>
    %83 = arith.select %81, %78, %82 : vector<8x128xi1>, vector<8x128xf32>
    %cst_31 = arith.constant dense<0xFF800000> : vector<8xf32>
    %84 = vector.multi_reduction <maximumf>, %83, %cst_31 [1] : vector<8x128xf32> to vector<8xf32>
    %85 = vector.shape_cast %84 : vector<8xf32> to vector<8x1xf32>
    %86 = vector.broadcast %85 : vector<8x1xf32> to vector<8x128xf32>
    %87 = arith.subf %83, %86 : vector<8x128xf32>
    %88 = math.exp %87 : vector<8x128xf32>
    %cst_32 = arith.constant dense<0.000000e+00> : vector<8xf32>
    %89 = vector.multi_reduction <add>, %88, %cst_32 [1] : vector<8x128xf32> to vector<8xf32>
    %90 = vector.shape_cast %89 : vector<8xf32> to vector<8x1xf32>
    %91 = math.log %90 : vector<8x1xf32>
    %92 = vector.broadcast %85 : vector<8x1xf32> to vector<8x128xf32>
    %93 = arith.subf %78, %92 : vector<8x128xf32>
    %94 = vector.broadcast %91 : vector<8x1xf32> to vector<8x128xf32>
    %95 = arith.subf %93, %94 : vector<8x128xf32>
    %c5_i32_33 = arith.constant 5 : i32
    %96 = vector.broadcast %c5_i32_33 : i32 to vector<8x128xi32>
    %97 = arith.cmpi eq, %79, %96 : vector<8x128xi32>
    %cst_34 = arith.constant 0.000000e+00 : f32
    %98 = vector.broadcast %cst_34 : f32 to vector<8x128xf32>
    %99 = arith.select %97, %78, %98 : vector<8x128xi1>, vector<8x128xf32>
    %100 = arith.select %81, %95, %99 : vector<8x128xi1>, vector<8x128xf32>
    %c0_35 = arith.constant 0 : index
    %c0_36 = arith.constant 0 : index
    %101 = vector.load %arg13[%c0_35, %c0_36] : memref<8x128xf32, #tpu.memory_space<vmem>>, vector<8x128xf32>
    tpu.vector_store %arg13[%c0_35, %c0_36], %100 {strides = array<i32>} : memref<8x128xf32, #tpu.memory_space<vmem>>, vector<8x128xf32>,
    return
  }
  func.func @transform_0(%arg0: i32) -> (i32, i32) {
    %c0_i32 = arith.constant 0 : i32
    %c0_i32_0 = arith.constant 0 : i32
    return %arg0, %c0_i32 : i32, i32
  }
  func.func @transform_1(%arg0: i32) -> (i32, i32) {
    %c0_i32 = arith.constant 0 : i32
    %c0_i32_0 = arith.constant 0 : i32
    return %arg0, %c0_i32 : i32, i32
  }
  func.func @transform_2(%arg0: i32) -> (i32, i32) {
    %c0_i32 = arith.constant 0 : i32
    %c0_i32_0 = arith.constant 0 : i32
    %c0_i32_1 = arith.constant 0 : i32
    return %c0_i32, %c0_i32_0 : i32, i32
  }
  func.func @transform_3(%arg0: i32) -> (i32, i32) {
    %c0_i32 = arith.constant 0 : i32
    %c0_i32_0 = arith.constant 0 : i32
    %c0_i32_1 = arith.constant 0 : i32
    return %c0_i32, %c0_i32_0 : i32, i32
  }
  func.func @transform_4(%arg0: i32) -> (i32, i32) {
    %c0_i32 = arith.constant 0 : i32
    %c0_i32_0 = arith.constant 0 : i32
    %c0_i32_1 = arith.constant 0 : i32
    return %c0_i32, %c0_i32_0 : i32, i32
  }
  func.func @transform_5(%arg0: i32) -> (i32, i32) {
    %c0_i32 = arith.constant 0 : i32
    %c0_i32_0 = arith.constant 0 : i32
    %c0_i32_1 = arith.constant 0 : i32
    return %c0_i32, %c0_i32_0 : i32, i32
  }
  func.func @transform_6(%arg0: i32) -> (i32, i32) {
    %c0_i32 = arith.constant 0 : i32
    %c0_i32_0 = arith.constant 0 : i32
    %c0_i32_1 = arith.constant 0 : i32
    return %c0_i32, %c0_i32_0 : i32, i32
  }
  func.func @transform_7(%arg0: i32) -> (i32, i32) {
    %c0_i32 = arith.constant 0 : i32
    %c0_i32_0 = arith.constant 0 : i32
    %c0_i32_1 = arith.constant 0 : i32
    return %c0_i32, %c0_i32_0 : i32, i32
  }
  func.func @transform_8(%arg0: i32) -> (i32, i32) {
    %c0_i32 = arith.constant 0 : i32
    %c0_i32_0 = arith.constant 0 : i32
    %c0_i32_1 = arith.constant 0 : i32
    return %c0_i32, %c0_i32_0 : i32, i32
  }
  func.func @transform_9(%arg0: i32) -> (i32, i32) {
    %c0_i32 = arith.constant 0 : i32
    %c0_i32_0 = arith.constant 0 : i32
    %c0_i32_1 = arith.constant 0 : i32
    return %c0_i32, %c0_i32_0 : i32, i32
  }
  func.func @transform_10(%arg0: i32) -> (i32, i32) {
    %c0_i32 = arith.constant 0 : i32
    %c0_i32_0 = arith.constant 0 : i32
    %c0_i32_1 = arith.constant 0 : i32
    return %c0_i32, %c0_i32_0 : i32, i32
  }
  func.func @transform_11(%arg0: i32) -> (i32, i32) {
    %c0_i32 = arith.constant 0 : i32
    %c0_i32_0 = arith.constant 0 : i32
    %c0_i32_1 = arith.constant 0 : i32
    return %c0_i32, %c0_i32_0 : i32, i32
  }
  func.func @transform_12(%arg0: i32) -> (i32, i32) {
    %c0_i32 = arith.constant 0 : i32
    %c0_i32_0 = arith.constant 0 : i32
    return %arg0, %c0_i32 : i32, i32
  }
}

</mosaic_0001>

<bundles_post_ra>
// kernel: actor_critic_forward.1
= control target key start
LH: loop header
LB: loop body
LE: loop exit
PB: predicated region body
PF: predicated region fallthrough
CT: control target
= control target key end

     0   :  { %17 = vsyncpa [#allocation3], 0  ;;  %s1441_s24 = smov [#allocation2]   ;;  %s1442_s26 = smov 320   ;;  %s1689_s0 = inlined_call_operand.vmem [shape: bf16[8,147], index: 0, kind: input, shape index: {}]   ;;  %s1690_s1 = inlined_call_operand.vmem [shape: f32[8,4], index: 1, kind: input, shape index: {}]   ;;  %s1691_s2 = inlined_call_operand.hbm [shape: bf16[147,576], index: 2, kind: input, shape index: {}]   ;;  %s1692_s3 = inlined_call_operand.vmem [shape: f32[1,576], index: 3, kind: input, shape index: {}]   ;;  %s1693_s4 = inlined_call_operand.vmem [shape: bf16[144,128], index: 4, kind: input, shape index: {}]   ;;  %s1694_s5 = inlined_call_operand.vmem [shape: f32[1,128], index: 5, kind: input, shape index: {}]   ;;  %s1695_s6 = inlined_call_operand.vmem [shape: bf16[128,64], index: 6, kind: input, shape index: {}]   ;;  %s1696_s7 = inlined_call_operand.vmem [shape: f32[1,64], index: 7, kind: input, shape index: {}]   ;;  %s1697_s8 = inlined_call_operand.vmem [shape: bf16[68,128], index: 8, kind: input, shape index: {}]   ;;  %s1698_s9 = inlined_call_operand.vmem [shape: f32[1,128], index: 9, kind: input, shape index: {}]   ;;  %s1699_s10 = inlined_call_operand.vmem [shape: bf16[128,128], index: 10, kind: input, shape index: {}]   ;;  %s1700_s11 = inlined_call_operand.vmem [shape: f32[1,128], index: 11, kind: input, shape index: {}]   ;;  %s1701_s12 = inlined_call_operand.vmem [shape: f32[8,128], index: 12, kind: output, shape index: {}]  }
   0x1   :  { %s26_s23 = sshll.u32 %s1691_s2, 4  ;;  %s28_s25 = sshll.u32 %s1441_s24, 4  ;;  %s27_s23 = int_to_ptr.hbm [resolvable:$true] %s26_s23  ;;  %s29_s25 = int_to_ptr.vmem [resolvable:$true] %s28_s25 }
   0x2   :  { %s1443_s27 = smov 20  }
   0x3   :  { %34 = dma.hbm_to_vmem [thread:$0]  %s27_s23, 6080, %s29_s25, [#allocation3], %s1442_s26, %s1442_s26, %s1443_s27  }
   0x4   :  { %1439 = dma.done.wait [#allocation3], 6080  }
   0x5   :  { %1440 = vsyncadd [#allocation3], 4294961216  ;;  %vm385_vm0 = vcmask 1040384   ;;  %vm386_vm1 = vcmask 1041408   ;;  %v1444_v0 = vmov 65535   ;;  %v1527_v30 = vld [vmem:[%s1689_s0] sm:$0xff] }
   0x6   :  { %v387_v1 = vsel %vm385_vm0, 4294967295, %v1444_v0  ;;  %v1136_v2 = vld [vmem:[#allocation2 + $0x118] sm:$0xf]  ;;  %v1334_v3 = vld [vmem:[#allocation2 + $0x128] sm:$0xf0]  ;;  %v130_v38 = vunpack.c.h.b16 %v1527_v30  ;;  %vm381_vm2 = vcmask 154624  }
   0x7   :  { %v1144_v4 = vld [vmem:[#allocation2 + $0x120] sm:$0xf]  ;;  %v1137_v5 = vor.u32 %v1334_v3, %v1136_v2  ;;  %v1335_v6 = vld [vmem:[#allocation2 + $0x130] sm:$0xf0]  ;;  %v1116_v7 = vld [vmem:[#allocation2 + $0xf0] sm:$0xf] }
   0x8   :  { %v1329_v8 = vld [vmem:[#allocation2 + $0x100] sm:$0xf0]  ;;  %v1145_v9 = vor.u32 %v1335_v6, %v1144_v4  ;;  %v113_v10 = vld [vmem:[#allocation2 + $0x168] sm:$0x33]  ;;  %v1124_v11 = vld [vmem:[#allocation2 + $0xf8] sm:$0xf]  ;;  %v1533_v53 = vpack.c.b16 %v130_v38, %v130_v38 }
   0x9   :  { %v1330_v12 = vld [vmem:[#allocation2 + $0x108] sm:$0xf0]  ;;  %404 = vmatpush.bf16.msra.mxu0 %v1137_v5  ;;  %v1117_v13 = vor.u32 %v1329_v8, %v1116_v7  ;;  %v281_v14 = vunpack.c.l.b16 %v113_v10  ;;  %v1519_v15 = vsel %vm386_vm1, %v387_v1, 0  ;;  %v282_v16 = vunpack.c.h.b16 %v113_v10  ;;  %v1096_v17 = vld [vmem:[#allocation2 + $0xc8] sm:$0xf]  ;;  %s1446_s30 = smov 112  }
   0xa   :  { %456 = vmatpush.bf16.msra.mxu1 %v1145_v9  ;;  %v1125_v18 = vor.u32 %v1330_v12, %v1124_v11  ;;  %v1324_v19 = vld [vmem:[#allocation2 + $0xd8] sm:$0xf0]  ;;  %v1156_v20 = vld [vmem:[#allocation2 + $0x140] sm:$0xf]  ;;  %v1339_v21 = vld [vmem:[#allocation2 + $0x150] sm:$0xf0] }
   0xb   :  { %v331_v22 = vpack.c.b16 %v281_v14, %v281_v14  ;;  %v332_v23 = vpack.c.b16 %v282_v16, %v282_v16  ;;  %v1337_v24 = vld [vmem:[#allocation2 + $0x144] sm:$0xf]  ;;  %v1158_v25 = vld [vmem:[#allocation2 + $0x154] sm:$0xf0]  ;;  %v1521_v26 = vld [vmem:[#allocation2 + $0x170] sm:$0x33]  ;;  %v1097_v33 = vor.u32 %v1324_v19, %v1096_v17  ;;  %v1157_v41 = vor.u32 %v1339_v21, %v1156_v20 }
   0xc   :  { %v283_v27 = vunpack.c.l.b16 %v1521_v26  ;;  %v1104_v28 = vld [vmem:[#allocation2 + $0xd0] sm:$0xf]  ;;  %v1325_v29 = vld [vmem:[#allocation2 + $0xe0] sm:$0xf0]  ;;  %v1332_v34 = vld [vmem:[#allocation2 + $0x11c] sm:$0xf]  ;;  %v1161_v42 = vor.u32 %v1337_v24, %v1158_v25 }
   0xd   :  { %405 = vmatpush.bf16.msra.mxu0 %v1117_v13  ;;  %v390_v31 = vand.u32 %v1519_v15, %v331_v22  ;;  %v393_v32 = vand.u32 %v1519_v15, %v332_v23  ;;  %v1138_v35 = vld [vmem:[#allocation2 + $0x12c] sm:$0xf0]  ;;  %v1105_v37 = vor.u32 %v1325_v29, %v1104_v28  ;;  %v1076_v39 = vld [vmem:[#allocation2 + $0xa0] sm:$0xf]  ;;  %v1319_v40 = vld [vmem:[#allocation2 + $0xb0] sm:$0xf0]  ;;  %v284_v22 = vunpack.c.h.b16 %v1521_v26 }
   0xe   :  { %457 = vmatpush.bf16.msra.mxu1 %v1125_v18  ;;  %v333_v36 = vpack.c.b16 %v283_v27, %v283_v27  ;;  %v1084_v43 = vld [vmem:[#allocation2 + $0xa8] sm:$0xf]  ;;  %v1320_v44 = vld [vmem:[#allocation2 + $0xb8] sm:$0xf0]  ;;  %v1141_v45 = vor.u32 %v1332_v34, %v1138_v35  ;;  %v1327_v47 = vld [vmem:[#allocation2 + $0xf4] sm:$0xf]  ;;  %v1077_v49 = vor.u32 %v1319_v40, %v1076_v39  ;;  %v129_v26 = vunpack.c.l.b16 %v1527_v30 }
   0xf   :  { %423 = vmatpush.bf16.msra.mxu2 %v390_v31  ;;  %449 = vmatpush.bf16.msra.mxu3 %v393_v32  ;;  %v1118_v48 = vld [vmem:[#allocation2 + $0x104] sm:$0xf0]  ;;  %v1340_v51 = vld [vmem:[#allocation2 + $0x158] sm:$0xf0]  ;;  %v1333_v52 = vld [vmem:[#allocation2 + $0x124] sm:$0xf]  ;;  %v1085_v54 = vor.u32 %v1320_v44, %v1084_v43 }
  0x10   :  { %v396_v46 = vand.u32 %v1519_v15, %v333_v36  ;;  %v1164_v50 = vld [vmem:[#allocation2 + $0x148] sm:$0xf]  ;;  %v1146_v55 = vld [vmem:[#allocation2 + $0x134] sm:$0xf0]  ;;  %v1314_v57 = vld [vmem:[#allocation2 + $0x88] sm:$0xf0]  ;;  %v1121_v60 = vor.u32 %v1327_v47, %v1118_v48  ;;  %v1542_v48 = vpack.c.b16 %v129_v26, %v129_v26 }
  0x11   :  { %406 = vmatpush.bf16.msra.mxu0 %v1097_v33  ;;  %v1056_v56 = vld [vmem:[#allocation2 + $0x78] sm:$0xf]  ;;  %v1064_v58 = vld [vmem:[#allocation2 + $0x80] sm:$0xf]  ;;  %v1315_v59 = vld [vmem:[#allocation2 + $0x90] sm:$0xf0]  ;;  %v1165_v61 = vor.u32 %v1340_v51, %v1164_v50  ;;  %v1149_v62 = vor.u32 %v1333_v52, %v1146_v55 }
  0x12   :  { %458 = vmatpush.bf16.msra.mxu1 %v1105_v37  ;;  %v1057_v63 = vor.u32 %v1314_v57, %v1056_v56  ;;  %v1322_v0 = vld [vmem:[#allocation2 + $0xcc] sm:$0xf]  ;;  %v1098_v1 = vld [vmem:[#allocation2 + $0xdc] sm:$0xf0]  ;;  %v1328_v2 = vld [vmem:[#allocation2 + $0xfc] sm:$0xf]  ;;  %v1065_v3 = vor.u32 %v1315_v59, %v1064_v58  ;;  %v334_v37 = vpack.c.b16 %v284_v22, %v284_v22 }
  0x13   :  { %424 = vmatpush.bf16.msra.mxu2 %v1157_v41  ;;  %450 = vmatpush.bf16.msra.mxu3 %v1161_v42  ;;  %v1126_v4 = vld [vmem:[#allocation2 + $0x10c] sm:$0xf0]  ;;  %v1309_v6 = vld [vmem:[#allocation2 + $0x60] sm:$0xf0]  ;;  %v1044_v7 = vld [vmem:[#allocation2 + $0x58] sm:$0xf]  ;;  %v1101_v9 = vor.u32 %v1322_v0, %v1098_v1 }
  0x14   :  { %v1036_v5 = vld [vmem:[#allocation2 + $0x50] sm:$0xf]  ;;  %v1310_v8 = vld [vmem:[#allocation2 + $0x68] sm:$0xf0]  ;;  %v1129_v10 = vor.u32 %v1328_v2, %v1126_v4  ;;  %v1317_v12 = vld [vmem:[#allocation2 + $0xa4] sm:$0xf] }
  0x15   :  { %407 = vmatpush.bf16.msra.mxu0 %v1077_v49  ;;  %v1037_v11 = vor.u32 %v1309_v6, %v1036_v5  ;;  %v1078_v13 = vld [vmem:[#allocation2 + $0xb4] sm:$0xf0]  ;;  %v1323_v14 = vld [vmem:[#allocation2 + $0xd4] sm:$0xf]  ;;  %v1045_v16 = vor.u32 %v1310_v8, %v1044_v7  ;;  %v1106_v17 = vld [vmem:[#allocation2 + $0xe4] sm:$0xf0] }
  0x16   :  { %1175 = vmatmul.msk.bf16.vlgmr.msra.gmra.mxu3 %vm381_vm2, %v1533_v53  ;;  %459 = vmatpush.bf16.msra.mxu1 %v1085_v54  ;;  %v1016_v18 = vld [vmem:[#allocation2 + $0x28] sm:$0xf]  ;;  %v1304_v19 = vld [vmem:[#allocation2 + $0x38] sm:$0xf0]  ;;  %v1024_v20 = vld [vmem:[#allocation2 + $0x30] sm:$0xf]  ;;  %v1081_v23 = vor.u32 %v1317_v12, %v1078_v13  ;;  %v1109_v24 = vor.u32 %v1323_v14, %v1106_v17 }
  0x17   :  { %430 = vmatpush.bf16.msrb.mxu2 %v1141_v45  ;;  %475 = vmatpush.bf16.msrb.mxu3 %v396_v46  ;;  %v1305_v21 = vld [vmem:[#allocation2 + $0x40] sm:$0xf0]  ;;  %v1017_v25 = vor.u32 %v1304_v19, %v1016_v18  ;;  %v1312_v27 = vld [vmem:[#allocation2 + $0x7c] sm:$0xf]  ;;  %v1058_v28 = vld [vmem:[#allocation2 + $0x8c] sm:$0xf0]  ;;  %v399_v46 = vand.u32 %v1519_v15, %v334_v37 }
  0x18   :  { %1174 = vmatmul.msk.bf16.vlgmr.msra.gmra.mxu2 %vm381_vm2, %v1533_v53  ;;  %v1318_v29 = vld [vmem:[#allocation2 + $0xac] sm:$0xf]  ;;  %v1025_v31 = vor.u32 %v1305_v21, %v1024_v20  ;;  %v1086_v32 = vld [vmem:[#allocation2 + $0xbc] sm:$0xf0]  ;;  %v1299_v34 = vld [vmem:[#allocation2 + $0x10] sm:$0xf0]  ;;  %v1061_v38 = vor.u32 %v1312_v27, %v1058_v28 }
  0x19   :  { %408 = vmatpush.bf16.msra.mxu0 %v1057_v63  ;;  %v996_v33 = vld [vmem:[#allocation2] sm:$0xf]  ;;  %v1004_v35 = vld [vmem:[#allocation2 + $0x8] sm:$0xf]  ;;  %v1300_v36 = vld [vmem:[#allocation2 + $0x18] sm:$0xf0]  ;;  %v1089_v39 = vor.u32 %v1318_v29, %v1086_v32 }
  0x1a   :  { %460 = vmatpush.bf16.msra.mxu1 %v1065_v3  ;;  %v997_v40 = vor.u32 %v1299_v34, %v996_v33  ;;  %v1307_v41 = vld [vmem:[#allocation2 + $0x54] sm:$0xf]  ;;  %v1038_v42 = vld [vmem:[#allocation2 + $0x64] sm:$0xf0]  ;;  %v1005_v43 = vor.u32 %v1300_v36, %v1004_v35  ;;  %v1313_v44 = vld [vmem:[#allocation2 + $0x84] sm:$0xf] }
  0x1b   :  { %431 = vmatpush.bf16.msrb.mxu2 %v1121_v60  ;;  %476 = vmatpush.bf16.msrb.mxu3 %v1165_v61  ;;  %v1066_v45 = vld [vmem:[#allocation2 + $0x94] sm:$0xf0]  ;;  %v1041_v47 = vor.u32 %v1307_v41, %v1038_v42  ;;  %v1338_v49 = vld [vmem:[#allocation2 + $0x14c] sm:$0xf]  ;;  %v1166_v50 = vld [vmem:[#allocation2 + $0x15c] sm:$0xf0] }
  0x1c   :  { %v1069_v30 = vor.u32 %v1313_v44, %v1066_v45  ;;  %v1302_v51 = vld [vmem:[#allocation2 + $0x2c] sm:$0xf]  ;;  %v1018_v52 = vld [vmem:[#allocation2 + $0x3c] sm:$0xf0]  ;;  %v1308_v54 = vld [vmem:[#allocation2 + $0x5c] sm:$0xf]  ;;  %v1169_v56 = vor.u32 %v1338_v49, %v1166_v50 }
  0x1d   :  { %409 = vmatpush.bf16.msra.mxu0 %v1037_v11  ;;  %v1046_v55 = vld [vmem:[#allocation2 + $0x6c] sm:$0xf0]  ;;  %v1021_v57 = vor.u32 %v1302_v51, %v1018_v52  ;;  %v1297_v58 = vld [vmem:[#allocation2 + $0x4] sm:$0xf]  ;;  %v998_v60 = vld [vmem:[#allocation2 + $0x14] sm:$0xf0] }
  0x1e   :  { %461 = vmatpush.bf16.msra.mxu1 %v1045_v16  ;;  %v1049_v59 = vor.u32 %v1308_v54, %v1046_v55  ;;  %v1303_v61 = vld [vmem:[#allocation2 + $0x34] sm:$0xf]  ;;  %v1152_v63 = vld [vmem:[#allocation2 + $0x128] sm:$0xf]  ;;  %v1336_v0 = vld [vmem:[#allocation2 + $0x138] sm:$0xf0]  ;;  %v1001_v3 = vor.u32 %v1297_v58, %v998_v60 }
  0x1f   :  { %482 = vmatpush.bf16.msra.mxu3 %v1149_v62  ;;  %432 = vmatpush.bf16.msrb.mxu2 %v1101_v9  ;;  %v1026_v62 = vld [vmem:[#allocation2 + $0x44] sm:$0xf0]  ;;  %v115_v1 = vld [vmem:[#allocation2 + $0x178] sm:$0x3]  ;;  %v1153_v5 = vor.u32 %v1336_v0, %v1152_v63  ;;  %v1298_v6 = vld [vmem:[#allocation2 + $0xc] sm:$0xf] }
  0x20   :  { %v285_v2 = vunpack.c.l.b16 %v115_v1  ;;  %v1029_v4 = vor.u32 %v1303_v61, %v1026_v62  ;;  %v1006_v8 = vld [vmem:[#allocation2 + $0x1c] sm:$0xf0]  ;;  %v1172_v12 = vld [vmem:[#allocation2 + $0x150] sm:$0xf]  ;;  %v1341_v13 = vld [vmem:[#allocation2 + $0x160] sm:$0xf0] }
  0x21   :  { %410 = vmatpush.bf16.msra.mxu0 %v1017_v25  ;;  %v1132_v9 = vld [vmem:[#allocation2 + $0x100] sm:$0xf]  ;;  %v1009_v14 = vor.u32 %v1298_v6, %v1006_v8  ;;  %v1112_v17 = vld [vmem:[#allocation2 + $0xd8] sm:$0xf]  ;;  %v1326_v18 = vld [vmem:[#allocation2 + $0xe8] sm:$0xf0]  ;;  %v1173_v19 = vor.u32 %v1341_v13, %v1172_v12 }
  0x22   :  { %462 = vmatpush.bf16.msra.mxu1 %v1025_v31  ;;  %v335_v7 = vpack.c.b16 %v285_v2, %v285_v2  ;;  %v1113_v20 = vor.u32 %v1326_v18, %v1112_v17  ;;  %v1092_v21 = vld [vmem:[#allocation2 + $0xb0] sm:$0xf]  ;;  %v1321_v22 = vld [vmem:[#allocation2 + $0xc0] sm:$0xf0]  ;;  %v1052_v27 = vld [vmem:[#allocation2 + $0x60] sm:$0xf] }
  0x23   :  { %483 = vmatpush.bf16.msra.mxu3 %v1129_v10  ;;  %433 = vmatpush.bf16.msrb.mxu2 %v1081_v23  ;;  %v1331_v10 = vld [vmem:[#allocation2 + $0x110] sm:$0xf0]  ;;  %v1072_v23 = vld [vmem:[#allocation2 + $0x88] sm:$0xf]  ;;  %v1032_v31 = vld [vmem:[#allocation2 + $0x38] sm:$0xf] }
  0x24   :  { %v402_v11 = vand.u32 %v1519_v15, %v335_v7  ;;  %v1133_v16 = vor.u32 %v1331_v10, %v1132_v9  ;;  %v1093_v15 = vor.u32 %v1321_v22, %v1092_v21  ;;  %v1311_v28 = vld [vmem:[#allocation2 + $0x70] sm:$0xf0]  ;;  %v1306_v32 = vld [vmem:[#allocation2 + $0x48] sm:$0xf0]  ;;  %v1012_v34 = vld [vmem:[#allocation2 + $0x10] sm:$0xf] }
  0x25   :  { %411 = vmatpush.bf16.msra.mxu0 %v997_v40  ;;  %v1053_v29 = vor.u32 %v1311_v28, %v1052_v27  ;;  %v1033_v33 = vor.u32 %v1306_v32, %v1032_v31  ;;  %v1301_v35 = vld [vmem:[#allocation2 + $0x20] sm:$0xf0]  ;;  %vm545_vm3 = vcmask 261120   ;;  %s1447_s13 = smov 48   ;;  %s1448_s14 = smov 64   ;;  %vm576_vm4 = vcmask 130048  }
  0x26   :  { %1176 = vmatmul.msk.bf16.vlgmr.msrb.gmra.mxu3 %vm381_vm2, %v1533_v53  ;;  %463 = vmatpush.bf16.msra.mxu1 %v1005_v43  ;;  %v1013_v36 = vor.u32 %v1301_v35, %v1012_v34  ;;  %v116_v43 = vld [vmem:[%s1692_s3] sm:$0x1f]  ;;  %s1445_s3 = smov 32   ;;  %s1449_s15 = smov 96   ;;  %vm624_vm5 = vcmask 392192   ;;  %vm626_vm6 = vcmask 785408  }
  0x27   :  { %484 = vmatpush.bf16.msra.mxu3 %v1109_v24  ;;  %434 = vmatpush.bf16.msrb.mxu2 %v1061_v38  ;;  %v1316_v24 = vld [vmem:[#allocation2 + $0x98] sm:$0xf0]  ;;  %v118_v45 = vperm.slane %v116_v43, 0  ;;  %v119_v49 = vperm.slane %v116_v43, 1  ;;  %v120_v50 = vperm.slane %v116_v43, 2  ;;  %v122_v8 = vperm.slane %v116_v43, 4 }
  0x28   :  { %412 = vmatmul.bf16.vlgmr.msra.gmra.mxu0 %v1542_v48  ;;  %v1073_v25 = vor.u32 %v1316_v24, %v1072_v23  ;;  %vm824_vm7 = vcmask 523264   ;;  %vm867_vm8 = vcmask 556032  }
  0x29   :  { %501 = vmatpush.bf16.msrb.mxu0 %v399_v46  ;;  %464 = vmatmul.bf16.vlgmr.msra.gmra.mxu1 %v1542_v48 }
  0x2a   :  { %527 = vmatpush.bf16.msrb.mxu1 %v402_v11 }
  0x2b   :  { %485 = vmatpush.bf16.msra.mxu3 %v1089_v39  ;;  %435 = vmatpush.bf16.msrb.mxu2 %v1041_v47 }
  0x2d   :  { %502 = vmatpush.bf16.msrb.mxu0 %v1169_v56  ;;  %v121_v56 = vperm.slane %v116_v43, 3 }
  0x2e   :  { %528 = vmatpush.bf16.msrb.mxu1 %v1173_v19 }
  0x2f   :  { %486 = vmatpush.bf16.msra.mxu3 %v1069_v30  ;;  %436 = vmatpush.bf16.msrb.mxu2 %v1021_v57 }
  0x33   :  { %487 = vmatpush.bf16.msra.mxu3 %v1049_v59  ;;  %437 = vmatpush.bf16.msrb.mxu2 %v1001_v3 }
  0x36   :  { %438 = vmatmul.bf16.vlgmr.msrb.gmra.mxu2 %v1542_v48 }
  0x37   :  { %488 = vmatpush.bf16.msra.mxu3 %v1029_v4  ;;  %508 = vmatpush.bf16.msra.mxu2 %v1153_v5 }
  0x38   :  { %1177 = vmatmul.msk.bf16.vlgmr.msrb.gmra.mxu0 %vm381_vm2, %v1533_v53 }
  0x39   :  { %1178 = vmatmul.msk.bf16.vlgmr.msrb.gmra.mxu1 %vm381_vm2, %v1533_v53 }
  0x3b   :  { %489 = vmatpush.bf16.msra.mxu3 %v1009_v14  ;;  %509 = vmatpush.bf16.msra.mxu2 %v1133_v16 }
  0x3e   :  { %490 = vmatmul.bf16.vlgmr.msra.gmra.mxu3 %v1542_v48 }
  0x3f   :  { %510 = vmatpush.bf16.msra.mxu2 %v1113_v20 }
  0x43   :  { %511 = vmatpush.bf16.msra.mxu2 %v1093_v15 }
  0x47   :  { %512 = vmatpush.bf16.msra.mxu2 %v1073_v25 }
  0x4b   :  { %513 = vmatpush.bf16.msra.mxu2 %v1053_v29 }
  0x4f   :  { %514 = vmatpush.bf16.msra.mxu2 %v1033_v33 }
  0x53   :  { %515 = vmatpush.bf16.msra.mxu2 %v1013_v36 }
  0x56   :  { %516 = vmatmul.bf16.vlgmr.msra.gmra.mxu2 %v1542_v48 }
  0x99   :  { %v452_v53 = vpop.f32.mrf.mxu3 }
  0x9b   :  { %v426_v37 = vpop.f32.mrf.mxu2 }
  0xa1   :  { %v454_v38 = vpop.f32.mrf.mxu3 }
  0xa3   :  { %v428_v26 = vpop.f32.mrf.mxu2 }
  0xa5   :  { %v413_v39 = vpop.f32.mrf.mxu0 }
  0xa6   :  { %v465_v40 = vpop.f32.mrf.mxu1  ;;  %v414_v47 = vadd.f32 %v413_v39, %v118_v45 }
  0xa7   :  { %v466_v55 = vadd.f32 %v465_v40, %v120_v50  ;;  %v1349_v50 = vld [vmem:[%s1693_s4 + $0x38] sm:$0xff] }
  0xa8   :  { %v427_v52 = vadd.f32 %v426_v37, %v414_v47  ;;  %709 = vmatpush.bf16.msra.mxu0 %v1349_v50 }
  0xa9   :  { %v478_v41 = vpop.f32.mrf.mxu3 }
  0xaa   :  { %v534_v58 = vmax.f32 %v427_v52, 0.0  ;;  %v479_v61 = vadd.f32 %v478_v41, %v466_v55  ;;  %v1350_v52 = vld [vmem:[%s1693_s4 + $0x40] sm:$0xff]  ;;  %v1344_v55 = vld [vmem:[%s1693_s4 + $0x10] sm:$0xff] }
  0xab   :  { %729 = vmatpush.bf16.msra.mxu1 %v1350_v52  ;;  %v970_v52 = vlaneseq }
  0xac   :  { %v536_v4 = vmax.f32 %v479_v61, 0.0 }
  0xad   :  { %v415_v42 = vpop.f32.mrf.mxu0 }
  0xae   :  { %v467_v44 = vpop.f32.mrf.mxu1 }
  0xb1   :  { %v480_v46 = vpop.f32.mrf.mxu3 }
  0xb5   :  { %v504_v30 = vpop.f32.mrf.mxu0 }
  0xb6   :  { %v530_v51 = vpop.f32.mrf.mxu1 }
  0xb9   :  { %v439_v48 = vpop.f32.mrf.mxu2 }
  0xba   :  { %v440_v54 = vadd.f32 %v439_v48, %v119_v49  ;;  %v1347_v48 = vld [vmem:[%s1693_s4 + $0x28] sm:$0xff] }
  0xbc   :  { %v453_v57 = vadd.f32 %v452_v53, %v440_v54  ;;  %v1345_v54 = vld [vmem:[%s1693_s4 + $0x18] sm:$0xff] }
  0xbd   :  { %v506_v63 = vpop.f32.mrf.mxu0 }
  0xbe   :  { %v535_v59 = vmax.f32 %v453_v57, 0.0  ;;  %v532_v3 = vpop.f32.mrf.mxu1  ;;  %v1342_v57 = vld [vmem:[%s1693_s4] sm:$0xff] }
  0xc0   :  { %v1385_v0 = vpack.i.bf16 %v535_v59, %v534_v58 }
  0xc1   :  { %v491_v60 = vpop.f32.mrf.mxu3  ;;  %v441_v2 = vpop.f32.mrf.mxu2 }
  0xc2   :  { %v492_v62 = vadd.f32 %v491_v60, %v121_v56  ;;  %1386 = vrot.lane.b32.xlu1 %v1385_v0, %s1445_s3  ;;  %v1343_v56 = vld [vmem:[%s1693_s4 + $0x8] sm:$0xff] }
  0xc4   :  { %v505_v1 = vadd.f32 %v504_v30, %v492_v62  ;;  %v1348_v30 = vld [vmem:[%s1693_s4 + $0x30] sm:$0xff] }
  0xc5   :  { %710 = vmatpush.bf16.msra.mxu0 %v1348_v30 }
  0xc6   :  { %v537_v5 = vmax.f32 %v505_v1, 0.0 }
  0xc8   :  { %v1380_v6 = vpack.i.bf16 %v537_v5, %v536_v4 }
  0xc9   :  { %v493_v7 = vpop.f32.mrf.mxu3  ;;  %711 = vmatpush.bf16.msra.mxu0 %v1347_v48 }
  0xca   :  { %1381 = vrot.lane.b32.xlu0 %v1380_v6, %s1445_s3  ;;  %v1356_v7 = vld [vmem:[%s1695_s6 + $0x28] sm:$0xff] }
  0xd9   :  { %v517_v9 = vpop.f32.mrf.mxu2 }
  0xda   :  { %v518_v10 = vadd.f32 %v517_v9, %v122_v8  ;;  %v1355_v8 = vld [vmem:[%s1695_s6 + $0x20] sm:$0xff]  ;;  %v1354_v9 = vld [vmem:[%s1695_s6 + $0x18] sm:$0xff] }
  0xdc   :  { %v531_v11 = vadd.f32 %v530_v51, %v518_v10  ;;  %v1346_v51 = vld [vmem:[%s1693_s4 + $0x20] sm:$0xff]  ;;  %v1353_v10 = vld [vmem:[%s1695_s6 + $0x10] sm:$0xff] }
  0xdd   :  { %712 = vmatpush.bf16.msra.mxu0 %v1346_v51 }
  0xde   :  { %v538_v12 = vmax.f32 %v531_v11, 0.0  ;;  %v1352_v11 = vld [vmem:[%s1695_s6 + $0x8] sm:$0xff] }
  0xe0   :  { %559 = vrot.lane.b32.xlu0 %v538_v12, %s1445_s3  ;;  %v1351_v12 = vld [vmem:[%s1695_s6] sm:$0xff] }
  0xe1   :  { %v519_v13 = vpop.f32.mrf.mxu2  ;;  %713 = vmatpush.bf16.msra.mxu0 %v1345_v54  ;;  %v971_v54 = vand.u32 127, %v970_v52 }
  0xe2   :  { %v819_v13 = vld [vmem:[%s1690_s1] sm:$0xff] }
  0xe3   :  { %vm972_vm9 = vcmp.lt.s32.totalorder %v971_v54, 5  ;;  %vm985_vm10 = vcmp.eq.s32.totalorder %v971_v54, 5 }
  0xe5   :  { %714 = vmatpush.bf16.msra.mxu0 %v1344_v55  ;;  %v1408_v55 = vld [vmem:[%s1700_s11] ss:$0 sm:$0xff] }
  0xe9   :  { %715 = vmatpush.bf16.msra.mxu0 %v1343_v56 }
  0xed   :  { %716 = vmatpush.bf16.msra.mxu0 %v1342_v57 }
 0x134   :  { %v1387_v23 = vpop.permute.xlu1 %1386 }
 0x135   :  { %v1389_v24 = vunpack.i.h.bf16 %v1387_v23  ;;  %v1388_v25 = vunpack.i.l.bf16 %v1387_v23 }
 0x137   :  { %v546_v27 = vsel %vm545_vm3, %v1388_v25, %v1389_v24 }
 0x138   :  { %v548_v31 = vmax.f32 %v534_v58, %v546_v27  ;;  %v1358_v58 = vld [vmem:[%s1695_s6 + $0x38] sm:$0xff] }
 0x139   :  { %805 = vmatpush.bf16.msrb.mxu3 %v1358_v58 }
 0x13c   :  { %v1382_v14 = vpop.permute.xlu0 %1381 }
 0x13d   :  { %v1383_v16 = vunpack.i.l.bf16 %v1382_v14  ;;  %v1384_v20 = vunpack.i.h.bf16 %v1382_v14  ;;  %v835_v14 = vld [vmem:[%s1697_s8 + $0x20] sm:$0x3] }
 0x13f   :  { %v553_v17 = vmax.f32 %v535_v59, %v1383_v16  ;;  %v554_v18 = vmax.f32 %v536_v4, %v1383_v16  ;;  %v1357_v59 = vld [vmem:[%s1695_s6 + $0x30] sm:$0xff]  ;;  %v857_v16 = vunpack.c.l.b16 %v835_v14 }
 0x140   :  { %806 = vmatpush.bf16.msrb.mxu3 %v1357_v59 }
 0x141   :  { %v1390_v19 = vpack.i.bf16 %v554_v18, %v553_v17 }
 0x143   :  { %1391 = vrot.lane.b32.xlu1 %v1390_v19, %s1446_s30  ;;  %v1362_v19 = vld [vmem:[%s1697_s8 + $0x18] sm:$0xff] }
 0x144   :  { %807 = vmatpush.bf16.msrb.mxu3 %v1356_v7 }
 0x148   :  { %808 = vmatpush.bf16.msrb.mxu3 %v1355_v8 }
 0x14c   :  { %809 = vmatpush.bf16.msrb.mxu3 %v1354_v9 }
 0x150   :  { %810 = vmatpush.bf16.msrb.mxu3 %v1353_v10 }
 0x152   :  { %v560_v21 = vpop.permute.xlu0 %559 }
 0x153   :  { %v561_v22 = vsel %vm545_vm3, %v1384_v20, %v560_v21  ;;  %v1361_v21 = vld [vmem:[%s1697_s8 + $0x10] sm:$0xff] }
 0x154   :  { %v563_v15 = vmax.f32 %v537_v5, %v561_v22  ;;  %811 = vmatpush.bf16.msrb.mxu3 %v1352_v11 }
 0x156   :  { %603 = vrot.lane.b32.xlu2 %v563_v15, %s1446_s30 }
 0x158   :  { %812 = vmatpush.bf16.msrb.mxu3 %v1351_v12 }
 0x1b0   :  { %v604_v28 = vpop.permute.xlu2 %603 }
 0x1b1   :  { %v606_v29 = vmax.f32 %v563_v15, %v604_v28  ;;  %v1405_v15 = vld [vmem:[%s1694_s5] ss:$0 sm:$0xff] }
 0x1b3   :  { %v1395_v32 = vpack.i.bf16 %v606_v29, %v548_v31 }
 0x1b5   :  { %v1392_v33 = vpop.permute.xlu1 %1391  ;;  %1396 = vrot.lane.b32.xlu2 %v1395_v32, %s1446_s30  ;;  %v1359_v32 = vld [vmem:[%s1697_s8] sm:$0xff] }
 0x1b6   :  { %v1393_v34 = vunpack.i.l.bf16 %v1392_v33  ;;  %v1394_v35 = vunpack.i.h.bf16 %v1392_v33  ;;  %v1370_v33 = vld [vmem:[%s1699_s10 + $0x38] sm:$0xff] }
 0x1b7   :  { %957 = vmatpush.bf16.msrb.mxu1 %v1370_v33 }
 0x1b8   :  { %v583_v36 = vmax.f32 %v553_v17, %v1393_v34  ;;  %v588_v53 = vmax.f32 %v554_v18, %v1394_v35  ;;  %v862_v17 = vpack.c.b16 %v857_v16, %v857_v16  ;;  %v1369_v34 = vld [vmem:[%s1699_s10 + $0x30] sm:$0xff]  ;;  %v1368_v35 = vld [vmem:[%s1699_s10 + $0x28] sm:$0xff] }
 0x1ba   :  { %593 = vrot.lane.b32.xlu1 %v583_v36, %s1447_s13  ;;  %590 = vrot.lane.b32.xlu0 %v583_v36, %s1448_s14  ;;  %v872_v18 = vsel %vm386_vm1, %v862_v17, 0  ;;  %v1367_v36 = vld [vmem:[%s1699_s10 + $0x20] sm:$0xff] }
 0x1bb   :  { %877 = vmatpush.bf16.msrb.mxu2 %v872_v18  ;;  %958 = vmatpush.bf16.msrb.mxu1 %v1369_v34 }
 0x1bd   :  { %597 = vrot.lane.b32.xlu2 %v588_v53, %s1445_s3  ;;  %v1366_v53 = vld [vmem:[%s1699_s10 + $0x18] sm:$0xff] }
 0x1bf   :  { %878 = vmatpush.bf16.msrb.mxu2 %v1362_v19  ;;  %959 = vmatpush.bf16.msrb.mxu1 %v1368_v35 }
 0x1c2   :  { %611 = vrot.lane.b32.xlu0 %v606_v29, %s1449_s15 }
 0x1c3   :  { %879 = vmatpush.bf16.msrb.mxu2 %v1361_v21  ;;  %960 = vmatpush.bf16.msrb.mxu1 %v1367_v36 }
 0x1c7   :  { %961 = vmatpush.bf16.msrb.mxu1 %v1366_v53 }
 0x20f   :  { %v1397_v37 = vpop.permute.xlu2 %1396 }
 0x210   :  { %v1398_v38 = vunpack.i.l.bf16 %v1397_v37  ;;  %v1399_v44 = vunpack.i.h.bf16 %v1397_v37  ;;  %v1406_v37 = vld [vmem:[%s1696_s7] ss:$0 sm:$0xff] }
 0x212   :  { %v568_v26 = vmax.f32 %v548_v31, %v1398_v38  ;;  %v614_v46 = vsel %vm576_vm4, %v606_v29, %v1399_v44  ;;  %v1360_v31 = vld [vmem:[%s1697_s8 + $0x8] sm:$0xff]  ;;  %v1365_v44 = vld [vmem:[%s1699_s10 + $0x10] sm:$0xff] }
 0x213   :  { %880 = vmatpush.bf16.msrb.mxu2 %v1360_v31  ;;  %962 = vmatpush.bf16.msrb.mxu1 %v1365_v44 }
 0x214   :  { %570 = vrot.lane.b32.xlu1 %v568_v26, %s1446_s30 }
 0x217   :  { %v598_v41 = vpop.permute.xlu2 %597  ;;  %881 = vmatpush.bf16.msrb.mxu2 %v1359_v32 }
 0x21c   :  { %821 = vrot.lane.b32.xlu1 %v819_v13, %s1448_s14 }
 0x22c   :  { %v594_v39 = vpop.permute.xlu1 %593  ;;  %v591_v40 = vpop.permute.xlu0 %590 }
 0x22d   :  { %v600_v42 = vsel %vm576_vm4, %v591_v40, %v594_v39 }
 0x22e   :  { %v601_v43 = vsel %vm545_vm3, %v600_v42, %v598_v41 }
 0x22f   :  { %617 = vrot.lane.b32.xlu0 %v601_v43, %s1447_s13 }
 0x234   :  { %v612_v45 = vpop.permute.xlu0 %611 }
 0x235   :  { %v615_v47 = vsel %vm545_vm3, %v614_v46, %v612_v45  ;;  %v1364_v45 = vld [vmem:[%s1699_s10 + $0x8] sm:$0xff]  ;;  %v1363_v46 = vld [vmem:[%s1699_s10] sm:$0xff] }
 0x236   :  { %v1400_v49 = vpack.i.bf16 %v615_v47, %v568_v26  ;;  %963 = vmatpush.bf16.msrb.mxu1 %v1364_v45  ;;  %v1407_v47 = vld [vmem:[%s1698_s9] ss:$0 sm:$0xff] }
 0x238   :  { %1401 = vrot.lane.b32.xlu2 %v1400_v49, %s1449_s15 }
 0x23a   :  { %964 = vmatpush.bf16.msrb.mxu1 %v1363_v46 }
 0x286   :  { %v571_v63 = vpop.permute.xlu1 %570 }
 0x287   :  { %v577_v1 = vsel %vm576_vm4, %v568_v26, %v571_v63 }
 0x28e   :  { %v822_v39 = vpop.permute.xlu1 %821 }
 0x292   :  { %v1402_v60 = vpop.permute.xlu2 %1401 }
 0x293   :  { %v1404_v61 = vunpack.i.h.bf16 %v1402_v60  ;;  %v1403_v0 = vunpack.i.l.bf16 %v1402_v60 }
 0x295   :  { %v629_v62 = vpack.c.bf16 %v1404_v61, %v1404_v61  ;;  %v578_v3 = vsel %vm545_vm3, %v577_v1, %v1403_v0 }
 0x297   :  { %1215 = vmatmul.msk.bf16.vlgmr.msra.gmra.mxu1 %vm576_vm4, %v629_v62 }
 0x2a1   :  { %v618_v2 = vpop.permute.xlu0 %617 }
 0x2a2   :  { %v625_v4 = vsel %vm624_vm5, %v578_v3, %v618_v2 }
 0x2a3   :  { %v627_v5 = vsel %vm626_vm6, %v625_v4, %v1404_v61 }
 0x2a4   :  { %v628_v6 = vpack.c.bf16 %v627_v5, %v627_v5 }
 0x2a6   :  { %717 = vmatmul.bf16.vlgmr.msra.gmra.mxu0 %v628_v6 }
 0x314   :  { %v731_v20 = vpop.f32.mrf.mxu1 }
 0x31c   :  { %v733_v22 = vpop.f32.mrf.mxu1 }
 0x323   :  { %v718_v23 = vpop.f32.mrf.mxu0 }
 0x324   :  { %v719_v24 = vadd.f32 %v1405_v15, %v718_v23 }
 0x326   :  { %v732_v25 = vadd.f32 %v731_v20, %v719_v24 }
 0x328   :  { %v735_v27 = vmax.f32 %v732_v25, 0.0 }
 0x32a   :  { %v736_v28 = vpack.c.bf16 %v735_v27, %v735_v27 }
 0x32b   :  { %v720_v29 = vpop.f32.mrf.mxu0 }
 0x32c   :  { %813 = vmatmul.bf16.vlgmr.msrb.gmra.mxu3 %v736_v28 }
 0x3af   :  { %v814_v38 = vpop.f32.mrf.mxu3 }
 0x3b0   :  { %v815_v26 = vadd.f32 %v1406_v37, %v814_v38 }
 0x3b2   :  { %v818_v40 = vmax.f32 %v815_v26, 0.0 }
 0x3b4   :  { %v825_v41 = vsel %vm824_vm7, %v818_v40, %v822_v39 }
 0x3b5   :  { %v826_v42 = vpack.c.bf16 %v825_v41, %v825_v41 }
 0x3b7   :  { %v816_v43 = vpop.f32.mrf.mxu3  ;;  %1264 = vmatmul.msk.bf16.vlgmr.msrb.gmra.mxu2 %vm867_vm8, %v826_v42 }
 0x43a   :  { %v883_v49 = vpop.f32.mrf.mxu2 }
 0x43b   :  { %v884_v50 = vadd.f32 %v1407_v47, %v883_v49 }
 0x43d   :  { %1409 = vtanh.f32 %v884_v50 }
 0x442   :  { %v885_v30 = vpop.f32.mrf.mxu2 }
 0x443   :  { %v1410_v48 = vpop.eup %1409 }
 0x444   :  { %v888_v51 = vpack.c.bf16 %v1410_v48, %v1410_v48 }
 0x446   :  { %965 = vmatmul.bf16.vlgmr.msrb.gmra.mxu1 %v888_v51 }
 0x4c3   :  { %v966_v56 = vpop.f32.mrf.mxu1 }
 0x4c4   :  { %v967_v57 = vadd.f32 %v1408_v55, %v966_v56 }
 0x4c6   :  { %v973_v58 = vsel %vm972_vm9, %v967_v57, -1e+30  ;;  %v986_v5 = vsel %vm985_vm10, %v967_v57, 0.0 }
 0x4c7   :  { %974 = vmax.xlane.f32.xlu2 %v973_v58 }
 0x4cb   :  { %v968_v59 = vpop.f32.mrf.mxu1 }
 0x53a   :  { %v975_v60 = vpop.xlane.xlu2 %974 }
 0x53b   :  { %v976_v61 = vsub.f32 %v973_v58, %v975_v60  ;;  %v983_v2 = vsub.f32 %v967_v57, %v975_v60 }
 0x53d   :  { %v977_v62 = vmul.f32 1.442695, %v976_v61 }
 0x53f   :  { %1411 = vpow2.f32 %v977_v62 }
 0x545   :  { %v1412_v63 = vpop.eup %1411 }
 0x546   :  { %979 = vadd.xlane.f32.xlu0 %v1412_v63 }
 0x5b9   :  { %v980_v0 = vpop.xlane.xlu0 %979 }
 0x5ba   :  { %1413 = vlog2.f32 %v980_v0 }
 0x5c0   :  { %v1414_v1 = vpop.eup %1413 }
 0x5c1   :  { %v982_v3 = vmul.f32 0.6931472, %v1414_v1 }
 0x5c3   :  { %v984_v4 = vsub.f32 %v983_v2, %v982_v3 }
 0x5c5   :  { %v987_v6 = vsel %vm972_vm9, %v984_v4, %v986_v5 }
 0x5c6   :  { %988 = vst [vmem:[%s1701_s12] sm:$0xff] %v987_v6 }
 0x5c7   :  { %993 = vsyncpa [#allocation3], 1 }

</bundles_post_ra>
